<compile_context>
chip_gen: v5e
topology: v5e:2x2
jax: 0.10.0
libtpu: 0.0.40
codegen_flags: <defaults>
</compile_context>

<pallas_src>
import jax
import jax.numpy as jnp
from jax.experimental import pallas as pl
from jax.experimental.pallas import tpu as pltpu

LANE = 128


def _round_up(v, m):
    return (v + m - 1) // m * m


def _device_budget():
    """Generation-aware (row-tile target, scoped-VMEM limit)."""
    try:
        info = pltpu.get_tpu_info()
        vmem_cap = int(getattr(info, "vmem_capacity_bytes", 64 * 1024 * 1024))
    except Exception:
        vmem_cap = 64 * 1024 * 1024
    if vmem_cap >= 100 * 1024 * 1024:            # v5e / v6e: 128 MiB VMEM
        return 512, 96 * 1024 * 1024
    return 256, 48 * 1024 * 1024                 # v7x: 64 MiB VMEM


# ----------------------------- fused Pallas kernel ---------------------------

def _mae_fused_kernel(patches_ref, aux_ref,
                      pw_ref, pb_ref,
                      w1_ref, b1_ref, w2_ref, b2_ref,
                      dw_ref, db_ref, mtok_ref,
                      recon_ref):
    f32 = jnp.float32
    bf16 = jnp.bfloat16

    # --- patch embedding: bf16 (TM,K) @ (K,Dp), f32 accumulate ---------------
    patch_emb = jnp.dot(patches_ref[...], pw_ref[...],
                        preferred_element_type=f32) + pb_ref[...]

    # --- per-row auxiliary lanes: [cz, cy, cx, keep] (one packed side stream) -
    aux = aux_ref[...]                               # (TM, 4) f32
    cz = aux[:, 0:1]
    cy = aux[:, 1:2]
    cx = aux[:, 2:3]
    keep = aux[:, 3:4]                               # 1.0 = visible, 0.0 = masked

    # --- positional MLP: K=3 first layer as 3 VPU FMAs (no MXU feed) ---------
    w1 = w1_ref[...]                                 # (8, H) f32, rows 0..2 used
    h = cz * w1[0:1, :] + cy * w1[1:2, :] + cx * w1[2:3, :] + b1_ref[...]
    # TODO(synk): torch nn.GELU default is the exact erf form; tanh approximation
    # is used here (EUP-friendly, guaranteed Mosaic lowering).
    h = jax.nn.gelu(h)
    pos_emb = jnp.dot(h.astype(bf16), w2_ref[...],
                      preferred_element_type=f32) + b2_ref[...]

    # --- decoder input: kept tokens keep their patch embedding, masked tokens
    #     get the mask token; then + positional embedding.  (Replaces the torch
    #     scatter/scatter/add path with a per-row select.) --------------------
    mtok = mtok_ref[...]                             # (1, Dp) f32
    dec_in = pos_emb + mtok + keep * (patch_emb - mtok)
    recon_ref[...] = (jnp.dot(dec_in.astype(bf16), dw_ref[...],
                              preferred_element_type=f32)
                      + db_ref[...]).astype(recon_ref.dtype)


def mae_fused(patches, aux, params):
    """Fused MAE embed/select/decode over flattened tokens.

    patches : (M, patch_dim) bf16   flattened (channel-major) voxel patches
    aux     : (M, 4) f32            per-row [center_z, center_y, center_x, keep]
    Returns lane-padded recon of shape (M_pad, Op) in bf16.
    """
    M, K = patches.shape
    H = params["pos_w2"].shape[0]
    Dp = params["patch_w"].shape[1]
    Op = params["dec_w"].shape[1]

    tm_target, vmem_limit = _device_budget()
    # bf16 row tiles need the sublane dim to be a multiple of 16.
    TM = min(tm_target, _round_up(M, 16))
    TM = max(16, _round_up(TM, 16))
    M_pad = _round_up(M, TM)
    if M_pad != M:
        patches = jnp.pad(patches, ((0, M_pad - M), (0, 0)))
        aux = jnp.pad(aux, ((0, M_pad - M), (0, 0)))
    gm = M_pad // TM

    def row_spec(cols):
        return pl.BlockSpec((TM, cols), lambda i: (i, 0))

    def full_spec(rows, cols):
        # TODO(synk): at production Dp/Op (512-1024), single-buffer these
        # constant-index weight blocks (pl.Buffered(1) / manual scratch DMA)
        # to halve their VMEM footprint; negligible at these sizes.
        return pl.BlockSpec((rows, cols), lambda i: (0, 0))

    recon_p = pl.pallas_call(
        _mae_fused_kernel,
        out_shape=jax.ShapeDtypeStruct((M_pad, Op), jnp.bfloat16),
        grid=(gm,),
        in_specs=[
            row_spec(K),                                 # patches (full-K block, no lane pad in HBM)
            row_spec(4),                                 # aux: centers + keep mask
            full_spec(params["patch_w"].shape[0], Dp),   # patch_w
            full_spec(1, Dp),                            # patch_b
            full_spec(8, H),                             # pos_w1 (rows 0..2 real)
            full_spec(1, H),                             # pos_b1
            full_spec(H, Dp),                            # pos_w2
            full_spec(1, Dp),                            # pos_b2
            full_spec(Dp, Op),                           # dec_w
            full_spec(1, Op),                            # dec_b
            full_spec(1, Dp),                            # mask_token
        ],
        out_specs=pl.BlockSpec((TM, Op), lambda i: (i, 0)),
        compiler_params=pltpu.CompilerParams(
            dimension_semantics=("parallel",),
            vmem_limit_bytes=vmem_limit,
        ),
    )(patches, aux,
      params["patch_w"], params["patch_b"],
      params["pos_w1"], params["pos_b1"],
      params["pos_w2"], params["pos_b2"],
      params["dec_w"], params["dec_b"],
      params["mask_token"])
    return recon_p


# ----------------------------- glue (plain JAX) ------------------------------

def get_patch_centers(x_shape, patch_size):
    """Voxel-space centers of each non-overlapping patch. Returns (B, N, 3)."""
    B = x_shape[0]
    Z, Y, X = x_shape[2:]
    Pz, Py, Px = patch_size
    zc = (jnp.arange(Z // Pz, dtype=jnp.float32) + 0.5) * Pz
    yc = (jnp.arange(Y // Py, dtype=jnp.float32) + 0.5) * Py
    xc = (jnp.arange(X // Px, dtype=jnp.float32) + 0.5) * Px
    zz, yy, xx = jnp.meshgrid(zc, yc, xc, indexing="ij")
    centers = jnp.stack([zz.ravel(), yy.ravel(), xx.ravel()], axis=-1)   # (N, 3)
    return jnp.broadcast_to(centers[None], (B, centers.shape[0], 3))


def random_masking(key, B, N, masking_ratio, grid_shape=None):
    # TODO(synk): the reference random_masking's use of grid_shape is not defined
    # in the provided file; standard per-token MAE masking is used (len_keep floors).
    len_keep = int(N * (1.0 - masking_ratio))
    noise = jax.random.uniform(key, (B, N))
    ids_shuffle = jnp.argsort(noise, axis=1).astype(jnp.int32)
    return ids_shuffle[:, :len_keep], ids_shuffle[:, len_keep:]


def init_params(key, patch_dim, embed_dim, pos_hidden, output_dim):
    """Weights stored with lane-padded OUTPUT dims only; matmul weights in bf16."""
    ks = jax.random.split(key, 5)
    Dp = _round_up(embed_dim, LANE)
    Op = _round_up(output_dim, LANE)
    H = pos_hidden

    def pad2(a, rows, cols, dtype):
        out = jnp.zeros((rows, cols), dtype)
        return out.at[:a.shape[0], :a.shape[1]].set(a.astype(dtype))

    patch_w = jax.random.normal(ks[0], (patch_dim, embed_dim)) * 0.05
    pos_w1 = jax.random.normal(ks[1], (3, pos_hidden)) * 0.05
    pos_w2 = jax.random.normal(ks[2], (pos_hidden, embed_dim)) * 0.05
    dec_w = jax.random.normal(ks[3], (embed_dim, output_dim)) * 0.05
    mask_token = jax.random.normal(ks[4], (1, embed_dim)) * 0.05
    # NOTE: the reference Model also owns an `encoder`, but its output (latents)
    # is never returned nor consumed by forward(); it is dead code and omitted.

    return {
        "patch_w": pad2(patch_w, patch_dim, Dp, jnp.bfloat16),   # K stays unpadded
        "patch_b": jnp.zeros((1, Dp), jnp.float32),
        "pos_w1": pad2(pos_w1, 8, H, jnp.float32),               # 3 real rows, sublane-pad to 8
        "pos_b1": jnp.zeros((1, H), jnp.float32),
        "pos_w2": pad2(pos_w2, H, Dp, jnp.bfloat16),
        "pos_b2": jnp.zeros((1, Dp), jnp.float32),
        "dec_w": pad2(dec_w, Dp, Op, jnp.bfloat16),
        "dec_b": jnp.zeros((1, Op), jnp.float32),
        "mask_token": pad2(mask_token, 1, Dp, jnp.float32),
    }


def mae_forward(x, params, mask_key, *, patch_size, token_size, embed_dim,
                output_dim, masking_ratio=0.6):
    B, C, Z, Y, X = x.shape
    Pz, Py, Px = patch_size
    Zg, Yg, Xg = Z // Pz, Y // Py, X // Px
    N = Zg * Yg * Xg
    M = B * N
    patch_dim = C * Pz * Py * Px

    # --- patchify (Conv3d kernel=stride=patch -> matmul rows); the bf16 cast
    #     fuses into the transpose copy so the kernel streams half the bytes. ---
    # TODO(synk): at production volume sizes, gather the patch windows inside the
    # kernel via a grid over (B,Zg,Yg,Xg) to skip this materialized copy.
    patches = x.reshape(B, C, Zg, Pz, Yg, Py, Xg, Px)
    patches = patches.transpose(0, 2, 4, 6, 1, 3, 5, 7).reshape(M, patch_dim)
    patches = patches.astype(jnp.bfloat16)

    centers = get_patch_centers(x.shape, patch_size).reshape(M, 3)

    # --- random masking -> per-token keep mask (no (B,N,D) scatters needed) ---
    grid_shape = (Z // token_size[0], Y // token_size[1], X // token_size[2])
    if masking_ratio == 0.0:
        ids_keep = ids_mask = None
        keep = jnp.ones((B, N), jnp.float32)
    else:
        ids_keep, ids_mask = random_masking(mask_key, B, N, masking_ratio, grid_shape)
        keep = jnp.zeros((B, N), jnp.float32).at[
            jnp.arange(B)[:, None], ids_keep].set(1.0)

    # one packed per-row side stream: [cz, cy, cx, keep]  (16 B/row)
    aux = jnp.concatenate([centers, keep.reshape(M, 1)], axis=-1).astype(jnp.float32)

    # --- one fused Pallas kernel for embed / mask-select / +pos / decode ------
    recon_p = mae_fused(patches, aux, params)        # (M_pad, Op) bf16, lane-padded

    # TODO(synk): downstream consumers should take the lane-padded bf16 layout
    # directly; this de-pad slice only presents the reference (B,N,output_dim)
    # contract for the demo.
    recon = recon_p[:M, :output_dim].astype(jnp.float32).reshape(B, N, output_dim)
    if masking_ratio == 0.0:
        return recon, None, None
    return recon, ids_keep, ids_mask


# ----------------------------------- main ------------------------------------

if __name__ == "__main__":
    # Small shapes consistent with the module: 3D volume, patch = token = (2,4,4)
    B, C, Z, Y, X = 2, 1, 4, 8, 8
    patch_size = (2, 4, 4)
    token_size = (2, 4, 4)
    embed_dim = 32
    patch_dim = C * patch_size[0] * patch_size[1] * patch_size[2]    # 32
    output_dim = patch_dim                                           # reconstruct patch voxels
    masking_ratio = 0.6

    root = jax.random.PRNGKey(0)
    k_x, k_param, k_mask = jax.random.split(root, 3)

    x = jax.random.normal(k_x, (B, C, Z, Y, X), dtype=jnp.float32)
    params = init_params(k_param, patch_dim, embed_dim, pos_hidden=64,
                         output_dim=output_dim)

    recon, ids_keep, ids_mask = mae_forward(
        x, params, k_mask,
        patch_size=patch_size, token_size=token_size,
        embed_dim=embed_dim, output_dim=output_dim,
        masking_ratio=masking_ratio)

    jax.block_until_ready(recon)
    jax.block_until_ready(ids_keep)
    jax.block_until_ready(ids_mask)

    N = (Z // patch_size[0]) * (Y // patch_size[1]) * (X // patch_size[2])
    assert recon.shape == (B, N, output_dim), recon.shape
    assert bool(jnp.all(jnp.isfinite(recon)))
    print("KERNEL_OK")
</pallas_src>

<mosaic_0001>
module attributes {stable_mosaic.version = 11 : i64} {
  func.func @_mae_fused_kernel(%arg0: i32, %arg1: memref<16x32xbf16, #tpu.memory_space<vmem>>, %arg2: memref<16x4xf32, #tpu.memory_space<vmem>>, %arg3: memref<32x128xbf16, #tpu.memory_space<vmem>>, %arg4: memref<1x128xf32, #tpu.memory_space<vmem>>, %arg5: memref<8x64xf32, #tpu.memory_space<vmem>>, %arg6: memref<1x64xf32, #tpu.memory_space<vmem>>, %arg7: memref<64x128xbf16, #tpu.memory_space<vmem>>, %arg8: memref<1x128xf32, #tpu.memory_space<vmem>>, %arg9: memref<128x128xbf16, #tpu.memory_space<vmem>>, %arg10: memref<1x128xf32, #tpu.memory_space<vmem>>, %arg11: memref<1x128xf32, #tpu.memory_space<vmem>>, %arg12: memref<16x128xbf16, #tpu.memory_space<vmem>>) attributes {dimension_semantics = [#tpu.dimension_semantics<parallel>], iteration_bounds = array<i64: 1>, scalar_prefetch = 0 : i64, scratch_operands = 0 : i64, tpu.core_type = #tpu.core_type<tc>, window_params = [{transform_indices = @transform_0, window_bounds = array<i64: 16, 32>}, {transform_indices = @transform_1, window_bounds = array<i64: 16, 4>}, {pipeline_mode = #tpu.pipeline_mode<synchronous>, transform_indices = @transform_2, window_bounds = array<i64: 32, 128>}, {pipeline_mode = #tpu.pipeline_mode<synchronous>, transform_indices = @transform_3, window_bounds = array<i64: 1, 128>}, {pipeline_mode = #tpu.pipeline_mode<synchronous>, transform_indices = @transform_4, window_bounds = array<i64: 8, 64>}, {pipeline_mode = #tpu.pipeline_mode<synchronous>, transform_indices = @transform_5, window_bounds = array<i64: 1, 64>}, {pipeline_mode = #tpu.pipeline_mode<synchronous>, transform_indices = @transform_6, window_bounds = array<i64: 64, 128>}, {pipeline_mode = #tpu.pipeline_mode<synchronous>, transform_indices = @transform_7, window_bounds = array<i64: 1, 128>}, {pipeline_mode = #tpu.pipeline_mode<synchronous>, transform_indices = @transform_8, window_bounds = array<i64: 128, 128>}, {pipeline_mode = #tpu.pipeline_mode<synchronous>, transform_indices = @transform_9, window_bounds = array<i64: 1, 128>}, {pipeline_mode = #tpu.pipeline_mode<synchronous>, transform_indices = @transform_10, window_bounds = array<i64: 1, 128>}, {transform_indices = @transform_11, window_bounds = array<i64: 16, 128>}]} {
    %c0 = arith.constant 0 : index
    %c0_0 = arith.constant 0 : index
    %0 = vector.load %arg1[%c0, %c0_0] : memref<16x32xbf16, #tpu.memory_space<vmem>>, vector<16x32xbf16>
    %c0_1 = arith.constant 0 : index
    %c0_2 = arith.constant 0 : index
    %1 = vector.load %arg3[%c0_1, %c0_2] : memref<32x128xbf16, #tpu.memory_space<vmem>>, vector<32x128xbf16>
    %cst = arith.constant dense<0.000000e+00> : vector<16x128xf32>
    %2 = tpu.matmul %0, %1, %cst {dimension_numbers = #tpu.dot_dimension_numbers<[1], [0], [0], [1], [0, 0, 1, 1], [], []>} : vector<16x32xbf16>, vector<32x128xbf16>, vector<16x128xf32> -> vector<16x128xf32>
    %c0_3 = arith.constant 0 : index
    %c0_4 = arith.constant 0 : index
    %3 = vector.load %arg4[%c0_3, %c0_4] : memref<1x128xf32, #tpu.memory_space<vmem>>, vector<1x128xf32>
    %4 = vector.broadcast %3 : vector<1x128xf32> to vector<16x128xf32>
    %5 = arith.addf %2, %4 : vector<16x128xf32>
    %c0_5 = arith.constant 0 : index
    %c0_6 = arith.constant 0 : index
    %6 = vector.load %arg2[%c0_5, %c0_6] : memref<16x4xf32, #tpu.memory_space<vmem>>, vector<16x4xf32>
    %7 = vector.extract_strided_slice %6 {offsets = [0, 0], sizes = [16, 1], strides = [1, 1]} : vector<16x4xf32> to vector<16x1xf32>
    %8 = vector.extract_strided_slice %6 {offsets = [0, 1], sizes = [16, 1], strides = [1, 1]} : vector<16x4xf32> to vector<16x1xf32>
    %9 = vector.extract_strided_slice %6 {offsets = [0, 2], sizes = [16, 1], strides = [1, 1]} : vector<16x4xf32> to vector<16x1xf32>
    %10 = vector.extract_strided_slice %6 {offsets = [0, 3], sizes = [16, 1], strides = [1, 1]} : vector<16x4xf32> to vector<16x1xf32>
    %c0_7 = arith.constant 0 : index
    %c0_8 = arith.constant 0 : index
    %11 = vector.load %arg5[%c0_7, %c0_8] : memref<8x64xf32, #tpu.memory_space<vmem>>, vector<8x64xf32>
    %12 = vector.extract_strided_slice %11 {offsets = [0, 0], sizes = [1, 64], strides = [1, 1]} : vector<8x64xf32> to vector<1x64xf32>
    %13 = vector.broadcast %7 : vector<16x1xf32> to vector<16x64xf32>
    %14 = vector.broadcast %12 : vector<1x64xf32> to vector<16x64xf32>
    %15 = arith.mulf %13, %14 : vector<16x64xf32>
    %16 = vector.extract_strided_slice %11 {offsets = [1, 0], sizes = [1, 64], strides = [1, 1]} : vector<8x64xf32> to vector<1x64xf32>
    %17 = vector.broadcast %8 : vector<16x1xf32> to vector<16x64xf32>
    %18 = vector.broadcast %16 : vector<1x64xf32> to vector<16x64xf32>
    %19 = arith.mulf %17, %18 : vector<16x64xf32>
    %20 = arith.addf %15, %19 : vector<16x64xf32>
    %21 = vector.extract_strided_slice %11 {offsets = [2, 0], sizes = [1, 64], strides = [1, 1]} : vector<8x64xf32> to vector<1x64xf32>
    %22 = vector.broadcast %9 : vector<16x1xf32> to vector<16x64xf32>
    %23 = vector.broadcast %21 : vector<1x64xf32> to vector<16x64xf32>
    %24 = arith.mulf %22, %23 : vector<16x64xf32>
    %25 = arith.addf %20, %24 : vector<16x64xf32>
    %c0_9 = arith.constant 0 : index
    %c0_10 = arith.constant 0 : index
    %26 = vector.load %arg6[%c0_9, %c0_10] : memref<1x64xf32, #tpu.memory_space<vmem>>, vector<1x64xf32>
    %27 = vector.broadcast %26 : vector<1x64xf32> to vector<16x64xf32>
    %28 = arith.addf %25, %27 : vector<16x64xf32>
    %29 = arith.mulf %28, %28 : vector<16x64xf32>
    %30 = arith.mulf %28, %29 : vector<16x64xf32>
    %cst_11 = arith.constant 4.471500e-02 : f32
    %31 = vector.broadcast %cst_11 : f32 to vector<16x64xf32>
    %32 = arith.mulf %31, %30 : vector<16x64xf32>
    %33 = arith.addf %28, %32 : vector<16x64xf32>
    %cst_12 = arith.constant 0.797884583 : f32
    %34 = vector.broadcast %cst_12 : f32 to vector<16x64xf32>
    %35 = arith.mulf %34, %33 : vector<16x64xf32>
    %36 = math.tanh %35 : vector<16x64xf32>
    %cst_13 = arith.constant 1.000000e+00 : f32
    %37 = vector.broadcast %cst_13 : f32 to vector<16x64xf32>
    %38 = arith.addf %37, %36 : vector<16x64xf32>
    %cst_14 = arith.constant 5.000000e-01 : f32
    %39 = vector.broadcast %cst_14 : f32 to vector<16x64xf32>
    %40 = arith.mulf %39, %38 : vector<16x64xf32>
    %41 = arith.mulf %28, %40 : vector<16x64xf32>
    %42 = arith.truncf %41 : vector<16x64xf32> to vector<16x64xbf16>
    %c0_15 = arith.constant 0 : index
    %c0_16 = arith.constant 0 : index
    %43 = vector.load %arg7[%c0_15, %c0_16] : memref<64x128xbf16, #tpu.memory_space<vmem>>, vector<64x128xbf16>
    %cst_17 = arith.constant dense<0.000000e+00> : vector<16x128xf32>
    %44 = tpu.matmul %42, %43, %cst_17 {dimension_numbers = #tpu.dot_dimension_numbers<[1], [0], [0], [1], [0, 0, 1, 1], [], []>} : vector<16x64xbf16>, vector<64x128xbf16>, vector<16x128xf32> -> vector<16x128xf32>
    %c0_18 = arith.constant 0 : index
    %c0_19 = arith.constant 0 : index
    %45 = vector.load %arg8[%c0_18, %c0_19] : memref<1x128xf32, #tpu.memory_space<vmem>>, vector<1x128xf32>
    %46 = vector.broadcast %45 : vector<1x128xf32> to vector<16x128xf32>
    %47 = arith.addf %44, %46 : vector<16x128xf32>
    %c0_20 = arith.constant 0 : index
    %c0_21 = arith.constant 0 : index
    %48 = vector.load %arg11[%c0_20, %c0_21] : memref<1x128xf32, #tpu.memory_space<vmem>>, vector<1x128xf32>
    %49 = vector.broadcast %48 : vector<1x128xf32> to vector<16x128xf32>
    %50 = arith.addf %47, %49 : vector<16x128xf32>
    %51 = vector.broadcast %48 : vector<1x128xf32> to vector<16x128xf32>
    %52 = arith.subf %5, %51 : vector<16x128xf32>
    %53 = vector.broadcast %10 : vector<16x1xf32> to vector<16x128xf32>
    %54 = arith.mulf %53, %52 : vector<16x128xf32>
    %55 = arith.addf %50, %54 : vector<16x128xf32>
    %56 = arith.truncf %55 : vector<16x128xf32> to vector<16x128xbf16>
    %c0_22 = arith.constant 0 : index
    %c0_23 = arith.constant 0 : index
    %57 = vector.load %arg9[%c0_22, %c0_23] : memref<128x128xbf16, #tpu.memory_space<vmem>>, vector<128x128xbf16>
    %cst_24 = arith.constant dense<0.000000e+00> : vector<16x128xf32>
    %58 = tpu.matmul %56, %57, %cst_24 {dimension_numbers = #tpu.dot_dimension_numbers<[1], [0], [0], [1], [0, 0, 1, 1], [], []>} : vector<16x128xbf16>, vector<128x128xbf16>, vector<16x128xf32> -> vector<16x128xf32>
    %c0_25 = arith.constant 0 : index
    %c0_26 = arith.constant 0 : index
    %59 = vector.load %arg10[%c0_25, %c0_26] : memref<1x128xf32, #tpu.memory_space<vmem>>, vector<1x128xf32>
    %60 = vector.broadcast %59 : vector<1x128xf32> to vector<16x128xf32>
    %61 = arith.addf %58, %60 : vector<16x128xf32>
    %62 = arith.truncf %61 : vector<16x128xf32> to vector<16x128xbf16>
    %c0_27 = arith.constant 0 : index
    %c0_28 = arith.constant 0 : index
    %63 = vector.load %arg12[%c0_27, %c0_28] : memref<16x128xbf16, #tpu.memory_space<vmem>>, vector<16x128xbf16>
    tpu.vector_store %arg12[%c0_27, %c0_28], %62 {strides = array<i32>} : memref<16x128xbf16, #tpu.memory_space<vmem>>, vector<16x128xbf16>,
    return
  }
  func.func @transform_0(%arg0: i32) -> (i32, i32) {
    %c0_i32 = arith.constant 0 : i32
    %c0_i32_0 = arith.constant 0 : i32
    return %arg0, %c0_i32 : i32, i32
  }
  func.func @transform_1(%arg0: i32) -> (i32, i32) {
    %c0_i32 = arith.constant 0 : i32
    %c0_i32_0 = arith.constant 0 : i32
    return %arg0, %c0_i32 : i32, i32
  }
  func.func @transform_2(%arg0: i32) -> (i32, i32) {
    %c0_i32 = arith.constant 0 : i32
    %c0_i32_0 = arith.constant 0 : i32
    %c0_i32_1 = arith.constant 0 : i32
    return %c0_i32, %c0_i32_0 : i32, i32
  }
  func.func @transform_3(%arg0: i32) -> (i32, i32) {
    %c0_i32 = arith.constant 0 : i32
    %c0_i32_0 = arith.constant 0 : i32
    %c0_i32_1 = arith.constant 0 : i32
    return %c0_i32, %c0_i32_0 : i32, i32
  }
  func.func @transform_4(%arg0: i32) -> (i32, i32) {
    %c0_i32 = arith.constant 0 : i32
    %c0_i32_0 = arith.constant 0 : i32
    %c0_i32_1 = arith.constant 0 : i32
    return %c0_i32, %c0_i32_0 : i32, i32
  }
  func.func @transform_5(%arg0: i32) -> (i32, i32) {
    %c0_i32 = arith.constant 0 : i32
    %c0_i32_0 = arith.constant 0 : i32
    %c0_i32_1 = arith.constant 0 : i32
    return %c0_i32, %c0_i32_0 : i32, i32
  }
  func.func @transform_6(%arg0: i32) -> (i32, i32) {
    %c0_i32 = arith.constant 0 : i32
    %c0_i32_0 = arith.constant 0 : i32
    %c0_i32_1 = arith.constant 0 : i32
    return %c0_i32, %c0_i32_0 : i32, i32
  }
  func.func @transform_7(%arg0: i32) -> (i32, i32) {
    %c0_i32 = arith.constant 0 : i32
    %c0_i32_0 = arith.constant 0 : i32
    %c0_i32_1 = arith.constant 0 : i32
    return %c0_i32, %c0_i32_0 : i32, i32
  }
  func.func @transform_8(%arg0: i32) -> (i32, i32) {
    %c0_i32 = arith.constant 0 : i32
    %c0_i32_0 = arith.constant 0 : i32
    %c0_i32_1 = arith.constant 0 : i32
    return %c0_i32, %c0_i32_0 : i32, i32
  }
  func.func @transform_9(%arg0: i32) -> (i32, i32) {
    %c0_i32 = arith.constant 0 : i32
    %c0_i32_0 = arith.constant 0 : i32
    %c0_i32_1 = arith.constant 0 : i32
    return %c0_i32, %c0_i32_0 : i32, i32
  }
  func.func @transform_10(%arg0: i32) -> (i32, i32) {
    %c0_i32 = arith.constant 0 : i32
    %c0_i32_0 = arith.constant 0 : i32
    %c0_i32_1 = arith.constant 0 : i32
    return %c0_i32, %c0_i32_0 : i32, i32
  }
  func.func @transform_11(%arg0: i32) -> (i32, i32) {
    %c0_i32 = arith.constant 0 : i32
    %c0_i32_0 = arith.constant 0 : i32
    return %arg0, %c0_i32 : i32, i32
  }
}

</mosaic_0001>

<bundles_post_ra>
// kernel: tpu_custom_call.1
= control target key start
LH: loop header
LB: loop body
LE: loop exit
PB: predicated region body
PF: predicated region fallthrough
CT: control target
= control target key end

     0   :  { %16 = vsyncpa [#allocation3], 0  ;;  %s755_s0 = inlined_call_operand.hbm [shape: bf16[16,32], index: 0, kind: input, shape index: {}]   ;;  %s756_s1 = inlined_call_operand.vmem [shape: f32[16,4], index: 1, kind: input, shape index: {}]   ;;  %s757_s2 = inlined_call_operand.vmem [shape: bf16[32,128], index: 2, kind: input, shape index: {}]   ;;  %s758_s3 = inlined_call_operand.vmem [shape: f32[1,128], index: 3, kind: input, shape index: {}]   ;;  %s759_s4 = inlined_call_operand.hbm [shape: f32[8,64], index: 4, kind: input, shape index: {}]   ;;  %s760_s5 = inlined_call_operand.vmem [shape: f32[1,64], index: 5, kind: input, shape index: {}]   ;;  %s761_s6 = inlined_call_operand.hbm [shape: bf16[64,128], index: 6, kind: input, shape index: {}]   ;;  %s762_s7 = inlined_call_operand.vmem [shape: f32[1,128], index: 7, kind: input, shape index: {}]   ;;  %s763_s8 = inlined_call_operand.hbm [shape: bf16[128,128], index: 8, kind: input, shape index: {}]   ;;  %s764_s9 = inlined_call_operand.vmem [shape: f32[1,128], index: 9, kind: input, shape index: {}]   ;;  %s765_s10 = inlined_call_operand.vmem [shape: f32[1,128], index: 10, kind: input, shape index: {}]   ;;  %s766_s11 = inlined_call_operand.hbm [shape: bf16[16,128], index: 11, kind: output, shape index: {}]  }
   0x1   :  { %17 = vsyncpa [#allocation6], 0 }
   0x2   :  { %18 = vsyncpa [#allocation9], 0  ;;  %s44_s19 = sshll.u32 %s759_s4, 4  ;;  %s45_s19 = int_to_ptr.hbm [resolvable:$true] %s44_s19 }
   0x3   :  { %19 = vsyncpa [#allocation4], 0  ;;  %s630_s20 = smov [#allocation5]   ;;  %s24_s24 = sshll.u32 %s755_s0, 4  ;;  %s25_s24 = int_to_ptr.hbm [resolvable:$true] %s24_s24 }
   0x4   :  { %s46_s21 = sshll.u32 %s630_s20, 4  ;;  %s631_s25 = smov [#allocation2]   ;;  %s47_s21 = int_to_ptr.vmem [resolvable:$true] %s46_s21 }
   0x5   :  { %49 = dma.hbm_to_vmem [thread:$0]  %s45_s19, 128, %s47_s21, [#allocation6]  }
   0x6   :  { %s26_s26 = sshll.u32 %s631_s25, 4  ;;  %s632_s27 = smov 64   ;;  %s27_s26 = int_to_ptr.vmem [resolvable:$true] %s26_s26 }
   0x7   :  { %s633_s28 = smov 4   ;;  %s56_s30 = sshll.u32 %s761_s6, 4  ;;  %s57_s30 = int_to_ptr.hbm [resolvable:$true] %s56_s30 }
   0x8   :  { %32 = dma.hbm_to_vmem [thread:$0]  %s25_s24, 128, %s27_s26, [#allocation3], %s632_s27, %s632_s27, %s633_s28  }
   0x9   :  { %s634_s12 = smov [#allocation7]   ;;  %s71_s15 = sshll.u32 %s763_s8, 4  ;;  %s72_s15 = int_to_ptr.hbm [resolvable:$true] %s71_s15 }
   0xa   :  { %s58_s13 = sshll.u32 %s634_s12, 4  ;;  %s635_s16 = smov [#allocation8]   ;;  %s59_s13 = int_to_ptr.vmem [resolvable:$true] %s58_s13 }
   0xb   :  { %64 = dma.hbm_to_vmem [thread:$0]  %s57_s30, 512, %s59_s13, [#allocation6], %s632_s27, %s632_s27, %s633_s28  }
   0xc   :  { %s73_s17 = sshll.u32 %s635_s16, 4  ;;  %s74_s17 = int_to_ptr.vmem [resolvable:$true] %s73_s17 }
   0xd   :  { %79 = dma.hbm_to_vmem [thread:$0]  %s72_s15, 1024, %s74_s17, [#allocation9], %s632_s27, %s632_s27, %s633_s28  }
   0xe   :  { %622 = dma.done.wait [#allocation3], 128  }
   0xf   :  { %623 = vsyncadd [#allocation3], 4294967168 }
  0x10   :  { %624 = dma.done.wait [#allocation6], 640  }
  0x11   :  { %625 = vsyncadd [#allocation6], 4294966656 }
  0x12   :  { %626 = dma.done.wait [#allocation9], 1024  }
  0x13   :  { %627 = vsyncadd [#allocation9], 4294966272  ;;  %v636_v0 = vmov 1   ;;  %v637_v1 = vmov 0   ;;  %v638_v2 = vmov 2   ;;  %v146_v3 = vld [vmem:[%s756_s1] sm:$0xff] }
  0x14   :  { %489 = vset.pattern.permute.xlu1 %v636_v0  ;;  %488 = vset.pattern.permute.xlu0 %v637_v1  ;;  %v147_v4 = vld [vmem:[%s756_s1 + $0x8] sm:$0xff]  ;;  %v458_v7 = vld [vmem:[%s757_s2] sm:$0xff]  ;;  %vm128_vm0 = vcmask 261120   ;;  %v461_v10 = vld [vmem:[#allocation7 + $0x8] sm:$0xff]  ;;  %v639_v36 = vmov 3   ;;  %vm249_vm1 = vcmask 523264  }
  0x15   :  { %490 = vset.pattern.permute.xlu2 %v638_v2  ;;  %163 = vperm.xlu1 %489, %v146_v3   ;;  %v459_v5 = vld [vmem:[%s757_s2 + $0x8] sm:$0xff]  ;;  %v462_v8 = vld [vmem:[#allocation7 + $0x10] sm:$0xff]  ;;  %v460_v12 = vld [vmem:[#allocation7] sm:$0xff]  ;;  %s380_s0 = sshll.u32 %s766_s11, 4  ;;  %s381_s0 = int_to_ptr.hbm [resolvable:$true] %s380_s0 }
  0x16   :  { %151 = vperm.xlu0 %488, %v146_v3   ;;  %176 = vperm.xlu2 %490, %v146_v3   ;;  %v463_v6 = vld [vmem:[#allocation7 + $0x18] sm:$0xff]  ;;  %v457_v9 = vld [vmem:[#allocation2] sm:$0xff]  ;;  %v469_v57 = vld [vmem:[#allocation8 + $0x28] sm:$0xff] }
  0x17   :  { %138 = vmatpush.bf16.msra.mxu0 %v459_v5  ;;  %257 = vmatpush.bf16.msra.mxu1 %v463_v6  ;;  %v148_v11 = vld [vmem:[#allocation5] sm:$0xff]  ;;  %v493_v22 = vld [vmem:[%s760_s5] ss:$0 sm:$0xff]  ;;  %v468_v58 = vld [vmem:[#allocation8 + $0x20] sm:$0xff] }
  0x18   :  { %v183_v13 = vperm.slane %v148_v11, 2  ;;  %v170_v15 = vperm.slane %v148_v11, 1  ;;  %v159_v16 = vperm.slane %v148_v11, 0  ;;  %v471_v32 = vld [vmem:[#allocation8 + $0x38] sm:$0xff]  ;;  %v470_v56 = vld [vmem:[#allocation8 + $0x30] sm:$0xff]  ;;  %v465_v61 = vld [vmem:[#allocation8 + $0x8] sm:$0xff] }
  0x19   :  { %356 = vmatpush.bf16.msra.mxu2 %v471_v32  ;;  %v467_v59 = vld [vmem:[#allocation8 + $0x18] sm:$0xff]  ;;  %v466_v60 = vld [vmem:[#allocation8 + $0x10] sm:$0xff]  ;;  %v464_v62 = vld [vmem:[#allocation8] sm:$0xff] }
  0x1a   :  { %v494_v0 = vld [vmem:[%s758_s3] ss:$0 sm:$0xff] }
  0x1b   :  { %139 = vmatpush.bf16.msra.mxu0 %v458_v7  ;;  %258 = vmatpush.bf16.msra.mxu1 %v462_v8  ;;  %v496_v5 = vld [vmem:[%s765_s10] ss:$0 sm:$0xff]  ;;  %s640_s10 = smov [#allocation10]  }
  0x1c   :  { %s378_s30 = sshll.u32 %s640_s10, 4  ;;  %s379_s30 = int_to_ptr.vmem [resolvable:$true] %s378_s30 }
  0x1d   :  { %167 = vperm.xlu1 %489, %v147_v4   ;;  %357 = vmatpush.bf16.msra.mxu2 %v470_v56 }
  0x1e   :  { %156 = vperm.xlu0 %488, %v147_v4   ;;  %180 = vperm.xlu2 %490, %v147_v4  }
  0x1f   :  { %407 = vmatmul.msk.bf16.vlgmr.msra.gmra.mxu0 %vm128_vm0, %v457_v9  ;;  %259 = vmatpush.bf16.msra.mxu1 %v461_v10 }
  0x21   :  { %358 = vmatpush.bf16.msra.mxu2 %v469_v57 }
  0x23   :  { %260 = vmatpush.bf16.msra.mxu1 %v460_v12 }
  0x25   :  { %492 = vset.pattern.permute.xlu1 %v639_v36  ;;  %359 = vmatpush.bf16.msra.mxu2 %v468_v58 }
  0x26   :  { %491 = vset.pattern.permute.xlu0 %v639_v36  ;;  %280 = vperm.xlu1 %492, %v147_v4   ;;  %v495_v4 = vld [vmem:[%s762_s7] ss:$0 sm:$0xff] }
  0x27   :  { %276 = vperm.xlu0 %491, %v146_v3  }
  0x29   :  { %360 = vmatpush.bf16.msra.mxu2 %v467_v59 }
  0x2d   :  { %361 = vmatpush.bf16.msra.mxu2 %v466_v60 }
  0x31   :  { %362 = vmatpush.bf16.msra.mxu2 %v465_v61 }
  0x35   :  { %363 = vmatpush.bf16.msra.mxu2 %v464_v62 }
  0x70   :  { %v177_v14 = vpop.permute.xlu2 %176 }
  0x71   :  { %v184_v19 = vmul.f32 %v183_v13, %v177_v14 }
  0x78   :  { %v181_v26 = vpop.permute.xlu2 %180 }
  0x79   :  { %v185_v33 = vmul.f32 %v183_v13, %v181_v26 }
  0x87   :  { %v164_v17 = vpop.permute.xlu1 %163 }
  0x88   :  { %v152_v18 = vpop.permute.xlu0 %151  ;;  %v171_v20 = vmul.f32 %v170_v15, %v164_v17 }
  0x89   :  { %v160_v21 = vmul.f32 %v159_v16, %v152_v18 }
  0x8b   :  { %v173_v23 = vadd.f32 %v171_v20, %v160_v21 }
  0x8d   :  { %v186_v24 = vadd.f32 %v184_v19, %v173_v23 }
  0x8f   :  { %v192_v25 = vadd.f32 %v493_v22, %v186_v24  ;;  %v168_v27 = vpop.permute.xlu1 %167 }
  0x90   :  { %v157_v28 = vpop.permute.xlu0 %156  ;;  %v172_v30 = vmul.f32 %v170_v15, %v168_v27 }
  0x91   :  { %v194_v29 = vmul.f32 %v192_v25, %v192_v25  ;;  %v161_v31 = vmul.f32 %v159_v16, %v157_v28 }
  0x93   :  { %v174_v34 = vadd.f32 %v172_v30, %v161_v31  ;;  %v196_v35 = vmul.f32 %v194_v29, %v192_v25 }
  0x95   :  { %v187_v37 = vadd.f32 %v185_v33, %v174_v34  ;;  %v198_v38 = vmul.f32 0.044715, %v196_v35 }
  0x97   :  { %v193_v39 = vadd.f32 %v493_v22, %v187_v37  ;;  %v200_v40 = vadd.f32 %v198_v38, %v192_v25  ;;  %v497_v22 = vld [vmem:[%s764_s9] ss:$0 sm:$0xff] }
  0x98   :  { %v281_v11 = vpop.permute.xlu1 %280 }
  0x99   :  { %v195_v41 = vmul.f32 %v193_v39, %v193_v39  ;;  %v202_v42 = vmul.f32 0.7978846, %v200_v40  ;;  %v277_v9 = vpop.permute.xlu0 %276 }
  0x9b   :  { %v197_v43 = vmul.f32 %v195_v41, %v193_v39  ;;  %498 = vtanh.f32 %v202_v42 }
  0x9c   :  { %v141_v63 = vpop.f32.mrf.mxu0 }
  0x9d   :  { %v199_v44 = vmul.f32 0.044715, %v197_v43  ;;  %v142_v3 = vadd.f32 %v494_v0, %v141_v63 }
  0x9f   :  { %v201_v45 = vadd.f32 %v199_v44, %v193_v39  ;;  %v273_v8 = vsub.f32 %v142_v3, %v496_v5 }
  0xa1   :  { %v203_v46 = vmul.f32 0.7978846, %v201_v45  ;;  %v499_v47 = vpop.eup %498  ;;  %v283_v14 = vmul.f32 %v277_v9, %v273_v8 }
  0xa2   :  { %v206_v48 = vadd.f32 1.0, %v499_v47 }
  0xa3   :  { %500 = vtanh.f32 %v203_v46 }
  0xa4   :  { %v208_v51 = vmul.f32 0.5, %v206_v48  ;;  %v143_v1 = vpop.f32.mrf.mxu0 }
  0xa5   :  { %v144_v6 = vadd.f32 %v494_v0, %v143_v1 }
  0xa6   :  { %v210_v53 = vmul.f32 %v208_v51, %v192_v25 }
  0xa7   :  { %v274_v10 = vsub.f32 %v144_v6, %v496_v5 }
  0xa9   :  { %v501_v49 = vpop.eup %500  ;;  %v284_v16 = vmul.f32 %v281_v11, %v274_v10 }
  0xaa   :  { %v207_v50 = vadd.f32 1.0, %v501_v49 }
  0xac   :  { %v209_v52 = vmul.f32 0.5, %v207_v50 }
  0xae   :  { %v211_v54 = vmul.f32 %v209_v52, %v193_v39 }
  0xb0   :  { %v212_v55 = vpack.c.bf16 %v211_v54, %v210_v53 }
  0xb2   :  { %424 = vmatmul.msk.bf16.vlgmr.msra.gmra.mxu1 %vm249_vm1, %v212_v55 }
 0x12f   :  { %v262_v2 = vpop.f32.mrf.mxu1 }
 0x130   :  { %v263_v7 = vadd.f32 %v495_v4, %v262_v2 }
 0x132   :  { %v271_v13 = vadd.f32 %v496_v5, %v263_v7 }
 0x134   :  { %v285_v18 = vadd.f32 %v283_v14, %v271_v13 }
 0x137   :  { %v264_v12 = vpop.f32.mrf.mxu1 }
 0x138   :  { %v265_v15 = vadd.f32 %v495_v4, %v264_v12 }
 0x13a   :  { %v272_v17 = vadd.f32 %v496_v5, %v265_v15 }
 0x13c   :  { %v286_v19 = vadd.f32 %v284_v16, %v272_v17 }
 0x13e   :  { %v287_v20 = vpack.c.bf16 %v286_v19, %v285_v18 }
 0x140   :  { %364 = vmatmul.bf16.vlgmr.msra.gmra.mxu2 %v287_v20 }
 0x1c3   :  { %v365_v21 = vpop.f32.mrf.mxu2 }
 0x1c4   :  { %v366_v24 = vadd.f32 %v497_v22, %v365_v21 }
 0x1cb   :  { %v367_v23 = vpop.f32.mrf.mxu2 }
 0x1cc   :  { %v368_v25 = vadd.f32 %v497_v22, %v367_v23 }
 0x1ce   :  { %v475_v26 = vpack.c.bf16 %v368_v25, %v366_v24 }
 0x1d0   :  { %476 = vst [vmem:[#allocation10] sm:$0xff] %v475_v26  }
 0x1d1   :  { %386 = dma.vmem_to_hbm [thread:$0]  %s379_s30, 128, %s381_s0, [#allocation4], %s632_s27, %s632_s27, %s633_s28  }
 0x1d2   :  { %628 = dma.done.wait [#allocation4], 128  }
 0x1d3   :  { %629 = vsyncadd [#allocation4], 4294967168 }
 0x1d4   :  { %391 = vsyncpa [#allocation3], 1 }
 0x1d5   :  { %392 = vsyncpa [#allocation6], 1 }
 0x1d6   :  { %393 = vsyncpa [#allocation9], 1 }
 0x1d7   :  { %394 = vsyncpa [#allocation4], 1 }

</bundles_post_ra>
